<compile_context>
chip_gen: v5e
topology: v5e:2x2
jax: 0.10.0
libtpu: 0.0.40
codegen_flags: <defaults>
</compile_context>

<pallas_src>
import functools

import jax
import jax.numpy as jnp
import numpy as np
from jax.experimental import pallas as pl
from jax.experimental.pallas import tpu as pltpu


def _gemm_bn_relu_kernel(p_ref, w_ref, b_ref, o_ref, *, apply_relu):
    # p_ref : (1, Kp, Tr)     im2col patches (Kp = padded k*k*Cin, Tr = row tile)
    # w_ref : (Coutp, Kp)     conv weights with BN scale folded in (compute dtype)
    # b_ref : (Coutp, 1)      f32 folded BN (+conv) bias
    # o_ref : (1, Coutp, Tr)  f32 output block (lane-dense last dim)
    acc = jnp.dot(w_ref[...], p_ref[0],
                  preferred_element_type=jnp.float32)          # MXU, (Coutp, Tr)
    y = acc + b_ref[...]                                       # f32 epilogue
    if apply_relu:
        y = jnp.maximum(y, 0.0)
    o_ref[0] = y.astype(o_ref.dtype)


def _round_up(x, m):
    return -(-x // m) * m


def _pick_row_tile(rows_padded):
    """Largest lane-dense (multiple-of-128) tile dividing the padded row count."""
    for cand in (4096, 2048, 1024, 512, 256, 128):
        if rows_padded % cand == 0:
            return cand
    return rows_padded  # unreachable when rows_padded % 128 == 0


def convbnrelu_pallas(x_nchw, weight, gamma, beta, running_mean, running_var,
                      *, k, s, p, d=1, conv_bias=None, bn=True, relu=True,
                      eps=1e-5, compute_dtype=jnp.bfloat16):
    """Forward pass of convbnrelu.

    x_nchw : (N, Cin, H, W)        float32, NCHW (PyTorch layout)
    weight : (Cout, Cin, k, k)     PyTorch Conv2d weight layout
    Returns (N, Cout, Hout, Wout)  float32, NCHW.
    """
    n, c_in, h, w = x_nchw.shape
    c_out = weight.shape[0]
    h_out = (h + 2 * p - d * (k - 1) - 1) // s + 1
    w_out = (w + 2 * p - d * (k - 1) - 1) // s + 1
    rows = h_out * w_out
    kk_cin = k * k * c_in

    # ---- fold BN (eval mode) + optional conv bias into (scale, bias) --------
    cb = jnp.zeros((c_out,), jnp.float32) if conv_bias is None else conv_bias
    if bn:
        scale = gamma / jnp.sqrt(running_var + eps)
        bias = beta + scale * (cb - running_mean)
    else:
        scale = jnp.ones((c_out,), jnp.float32)
        bias = cb
    # (Cout, Cin, kh, kw) -> (Cout, kh, kw, Cin) -> (Cout, k*k*Cin), scale folded.
    w2d = jnp.transpose(weight, (0, 2, 3, 1)).reshape(c_out, kk_cin)
    w2d = (w2d * scale[:, None]).astype(compute_dtype)
    bias2d = bias.reshape(c_out, 1).astype(jnp.float32)

    # ---- wrapper-side im2col (stays NCHW): patches (N, K, Hout*Wout) --------
    x_pad = jnp.pad(x_nchw, ((0, 0), (0, 0), (p, p), (p, p)))
    taps = []
    for kh in range(k):
        for kw in range(k):
            taps.append(jax.lax.slice(
                x_pad,
                (0, 0, kh * d, kw * d),
                (n, c_in,
                 kh * d + (h_out - 1) * s + 1,
                 kw * d + (w_out - 1) * s + 1),
                (1, 1, s, s)))                                  # (N, Cin, Hout, Wout)
    patches = jnp.stack(taps, axis=1)                           # (N, k*k, Cin, Ho, Wo)
    patches = patches.reshape(n, kk_cin, rows).astype(compute_dtype)

    # ---- pad to hardware-friendly extents (zeros are exact in the GEMM) -----
    sub_mult = 16 if compute_dtype == jnp.bfloat16 else 8       # packed sublanes
    kk_pad = _round_up(kk_cin, sub_mult)
    cout_pad = _round_up(c_out, 8)
    rows_pad = _round_up(rows, 128)                              # lane-dense stores

    if kk_pad != kk_cin or rows_pad != rows:
        patches = jnp.pad(patches,
                          ((0, 0), (0, kk_pad - kk_cin), (0, rows_pad - rows)))
    if kk_pad != kk_cin or cout_pad != c_out:
        w2d = jnp.pad(w2d, ((0, cout_pad - c_out), (0, kk_pad - kk_cin)))
    if cout_pad != c_out:
        bias2d = jnp.pad(bias2d, ((0, cout_pad - c_out), (0, 0)))

    tile_rows = _pick_row_tile(rows_pad)
    grid = (n, rows_pad // tile_rows)

    kernel = functools.partial(_gemm_bn_relu_kernel, apply_relu=relu)

    itemsize = jnp.dtype(compute_dtype).itemsize
    cost = pl.CostEstimate(
        flops=2 * n * cout_pad * kk_pad * rows_pad,
        transcendentals=0,
        bytes_accessed=(n * kk_pad * rows_pad * itemsize
                        + cout_pad * kk_pad * itemsize
                        + n * cout_pad * rows_pad * 4),
    )

    out = pl.pallas_call(
        kernel,
        out_shape=jax.ShapeDtypeStruct((n, cout_pad, rows_pad), jnp.float32),
        grid_spec=pltpu.PrefetchScalarGridSpec(
            num_scalar_prefetch=0,
            grid=grid,
            in_specs=[
                pl.BlockSpec((1, kk_pad, tile_rows), lambda b, r: (b, 0, r)),
                pl.BlockSpec((cout_pad, kk_pad), lambda b, r: (0, 0)),
                pl.BlockSpec((cout_pad, 1), lambda b, r: (0, 0)),
            ],
            out_specs=pl.BlockSpec((1, cout_pad, tile_rows),
                                   lambda b, r: (b, 0, r)),
        ),
        compiler_params=pltpu.CompilerParams(
            dimension_semantics=("parallel", "parallel")),
        cost_estimate=cost,
    )(patches, w2d, bias2d)

    # Drop padding, then contiguous reshape to NCHW (no transpose).
    out = out[:, :c_out, :rows]
    return out.reshape(n, c_out, h_out, w_out)


def _reference(x_nchw, weight, gamma, beta, running_mean, running_var,
               *, k, s, p, d, bn, relu, eps=1e-5):
    y = jax.lax.conv_general_dilated(
        x_nchw, weight,
        window_strides=(s, s),
        padding=((p, p), (p, p)),
        rhs_dilation=(d, d),
        dimension_numbers=("NCHW", "OIHW", "NCHW"),
    )
    if bn:
        sc = (gamma / jnp.sqrt(running_var + eps)).reshape(1, -1, 1, 1)
        bi = (beta - running_mean * gamma / jnp.sqrt(running_var + eps)
              ).reshape(1, -1, 1, 1)
        y = y * sc + bi
    if relu:
        y = jnp.maximum(y, 0.0)
    return y


if __name__ == "__main__":
    # convbnrelu(in_channel=4, out_channel=8, k=3, s=1, p=1)
    N, C_IN, C_OUT, H, W = 2, 4, 8, 16, 16
    K, S, P, D = 3, 1, 1, 1

    key = jax.random.PRNGKey(0)
    kx, kw, kg, kb, km, kv = jax.random.split(key, 6)

    x = jax.random.normal(kx, (N, C_IN, H, W), dtype=jnp.float32)
    weight = jax.random.normal(kw, (C_OUT, C_IN, K, K), dtype=jnp.float32) * 0.1
    gamma = jax.random.uniform(kg, (C_OUT,), dtype=jnp.float32, minval=0.5, maxval=1.5)
    beta = jax.random.normal(kb, (C_OUT,), dtype=jnp.float32) * 0.1
    running_mean = jax.random.normal(km, (C_OUT,), dtype=jnp.float32) * 0.1
    running_var = jax.random.uniform(kv, (C_OUT,), dtype=jnp.float32,
                                     minval=0.5, maxval=1.5)

    ref = _reference(x, weight, gamma, beta, running_mean, running_var,
                     k=K, s=S, p=P, d=D, bn=True, relu=True)

    # f32 compute path: tight check against the XLA reference.
    out_f32 = convbnrelu_pallas(x, weight, gamma, beta, running_mean, running_var,
                                k=K, s=S, p=P, d=D, bn=True, relu=True,
                                compute_dtype=jnp.float32)
    out_f32 = jax.block_until_ready(out_f32)
    np.testing.assert_allclose(np.asarray(out_f32), np.asarray(ref),
                               rtol=1e-4, atol=1e-4)

    # bf16 MXU path (f32 accumulation / epilogue): loosened tolerance.
    out_bf16 = convbnrelu_pallas(x, weight, gamma, beta, running_mean, running_var,
                                 k=K, s=S, p=P, d=D, bn=True, relu=True,
                                 compute_dtype=jnp.bfloat16)
    out_bf16 = jax.block_until_ready(out_bf16)
    np.testing.assert_allclose(np.asarray(out_bf16), np.asarray(ref),
                               rtol=5e-2, atol=5e-2)

    print("KERNEL_OK")
</pallas_src>

<mosaic_0001>
module attributes {stable_mosaic.version = 11 : i64} {
  func.func @_gemm_bn_relu_kernel(%arg0: i32, %arg1: i32, %arg2: memref<1x40x256xf32, #tpu.memory_space<vmem>>, %arg3: memref<8x40xf32, #tpu.memory_space<vmem>>, %arg4: memref<8x1xf32, #tpu.memory_space<vmem>>, %arg5: memref<1x8x256xf32, #tpu.memory_space<vmem>>) attributes {dimension_semantics = [#tpu.dimension_semantics<parallel>, #tpu.dimension_semantics<parallel>], iteration_bounds = array<i64: 2, 1>, scalar_prefetch = 0 : i64, scratch_operands = 0 : i64, tpu.core_type = #tpu.core_type<tc>, window_params = [{transform_indices = @transform_0, window_bounds = array<i64: 1, 40, 256>}, {pipeline_mode = #tpu.pipeline_mode<synchronous>, transform_indices = @transform_1, window_bounds = array<i64: 8, 40>}, {pipeline_mode = #tpu.pipeline_mode<synchronous>, transform_indices = @transform_2, window_bounds = array<i64: 8, 1>}, {transform_indices = @transform_3, window_bounds = array<i64: 1, 8, 256>}]} {
    %c0 = arith.constant 0 : index
    %c0_0 = arith.constant 0 : index
    %0 = vector.load %arg3[%c0, %c0_0] : memref<8x40xf32, #tpu.memory_space<vmem>>, vector<8x40xf32>
    %c0_1 = arith.constant 0 : index
    %c0_2 = arith.constant 0 : index
    %c0_3 = arith.constant 0 : index
    %1 = vector.load %arg2[%c0_1, %c0_2, %c0_3] : memref<1x40x256xf32, #tpu.memory_space<vmem>>, vector<1x40x256xf32>
    %2 = vector.shape_cast %1 : vector<1x40x256xf32> to vector<40x256xf32>
    %cst = arith.constant dense<0.000000e+00> : vector<8x256xf32>
    %3 = tpu.matmul %0, %2, %cst {dimension_numbers = #tpu.dot_dimension_numbers<[1], [0], [0], [1], [0, 0, 1, 1], [], []>} : vector<8x40xf32>, vector<40x256xf32>, vector<8x256xf32> -> vector<8x256xf32>
    %c0_4 = arith.constant 0 : index
    %c0_5 = arith.constant 0 : index
    %4 = vector.load %arg4[%c0_4, %c0_5] : memref<8x1xf32, #tpu.memory_space<vmem>>, vector<8x1xf32>
    %5 = vector.broadcast %4 : vector<8x1xf32> to vector<8x256xf32>
    %6 = arith.addf %3, %5 : vector<8x256xf32>
    %cst_6 = arith.constant 0.000000e+00 : f32
    %7 = vector.broadcast %cst_6 : f32 to vector<8x256xf32>
    %8 = arith.maximumf %6, %7 : vector<8x256xf32>
    %c0_7 = arith.constant 0 : index
    %c0_8 = arith.constant 0 : index
    %c0_9 = arith.constant 0 : index
    %9 = vector.load %arg5[%c0_7, %c0_8, %c0_9] : memref<1x8x256xf32, #tpu.memory_space<vmem>>, vector<1x8x256xf32>
    %10 = vector.shape_cast %9 : vector<1x8x256xf32> to vector<8x256xf32>
    %11 = vector.shape_cast %8 : vector<8x256xf32> to vector<1x8x256xf32>
    tpu.vector_store %arg5[%c0_7, %c0_8, %c0_9], %11 {strides = array<i32>} : memref<1x8x256xf32, #tpu.memory_space<vmem>>, vector<1x8x256xf32>,
    return
  }
  func.func @transform_0(%arg0: i32, %arg1: i32) -> (i32, i32, i32) {
    %c0_i32 = arith.constant 0 : i32
    %c0_i32_0 = arith.constant 0 : i32
    return %arg0, %c0_i32, %arg1 : i32, i32, i32
  }
  func.func @transform_1(%arg0: i32, %arg1: i32) -> (i32, i32) {
    %c0_i32 = arith.constant 0 : i32
    %c0_i32_0 = arith.constant 0 : i32
    %c0_i32_1 = arith.constant 0 : i32
    return %c0_i32, %c0_i32_0 : i32, i32
  }
  func.func @transform_2(%arg0: i32, %arg1: i32) -> (i32, i32) {
    %c0_i32 = arith.constant 0 : i32
    %c0_i32_0 = arith.constant 0 : i32
    %c0_i32_1 = arith.constant 0 : i32
    return %c0_i32, %c0_i32_0 : i32, i32
  }
  func.func @transform_3(%arg0: i32, %arg1: i32) -> (i32, i32, i32) {
    %c0_i32 = arith.constant 0 : i32
    %c0_i32_0 = arith.constant 0 : i32
    return %arg0, %c0_i32, %arg1 : i32, i32, i32
  }
}

</mosaic_0001>

<bundles_post_ra>
// kernel: tpu_custom_call.1
= control target key start
LH: loop header
LB: loop body
LE: loop exit
PB: predicated region body
PF: predicated region fallthrough
CT: control target
= control target key end

     0   :  { %8 = vsyncpa [#allocation3], 0  ;;  %s727_s0 = inlined_call_operand.hbm [shape: f32[2,40,256], index: 0, kind: input, shape index: {}]   ;;  %s728_s1 = inlined_call_operand.vmem [shape: f32[8,40], index: 1, kind: input, shape index: {}]   ;;  %s729_s2 = inlined_call_operand.vmem [shape: f32[8,1], index: 2, kind: input, shape index: {}]   ;;  %s730_s3 = inlined_call_operand.hbm [shape: f32[2,8,256], index: 3, kind: output, shape index: {}]  }
   0x1   :  { %10 = vsyncpa [#allocation3 + $0x1], 0 }
   0x2   :  { %11 = vsyncpa [#allocation4], 0 }
   0x3   :  { %13 = vsyncpa [#allocation4 + $0x1], 0  ;;  %s600_s12 = smov 0   ;;  %s602_s13 = smov 0  }
   0x4   :  { %s604_s14 = smov 0   ;;  %s606_s15 = smov 0  }
   0x5   :  { %s608_s16 = smov 0   ;;  %s610_s17 = smov 0  }
   0x6 LB: > { %s379_s18 = sadd.s32 4294967295, %s575_s17   ;;  %s380_s19 = sadd.s32 4294967294, %s575_s17   ;;  %s575_s17 = sphi %s610_s17, %s19_s17   ;;  %s571_s16 = sphi %s608_s16, %s739_s16   ;;  %s567_s15 = sphi %s606_s15, %s738_s15   ;;  %s563_s14 = sphi %s604_s14, %s737_s14   ;;  %s559_s13 = sphi %s602_s13, %s736_s13   ;;  %s555_s12 = sphi %s600_s12, %s735_s12  }
   0x7   : > { %s31_s20 = sadd.s32 1, %s571_s16  ;;  %s40_s21 = sadd.s32 1, %s563_s14 }
   0x8   : > { %p33_p0 = scmp.ge.s32.totalorder %s31_s20, 2  ;;  %p47_p1 = scmp.ne.s32.totalorder %s563_s14, %s559_s13 }
   0x9   : > { %p48_p2 = scmp.eq.s32.totalorder %s575_s17, 0  ;;  %p53_p3 = scmp.ne.s32.totalorder %s559_s13, %s555_s12 }
   0xa   : > { %s741_s20 = smov (%p33_p0, %s31_s20), 0  ;;  %p54_p5 = scmp.eq.s32.totalorder %s379_s18, 0 }
   0xb   : > { %p641_p4 = por %p48_p2, %p47_p1  ;;  %s35_s23 = ssub.s32 %s571_s16, %s741_s20 }
   0xc   : > { %p121_p6 = scmp.eq.s32.totalorder %s379_s18, 1  ;;  %p38_p7 = scmp.eq.s32.totalorder %s35_s23, 0 }
   0xd   : > { %p647_p8 = por %p54_p5, %p53_p3  ;;  %p127_p10 = scmp.eq.s32.totalorder %s380_s19, 1 }
   0xe   : > { %p651_p9 = por %p121_p6, %p47_p1  ;;  %p382_p12 = scmp.ge.s32.totalorder %s575_s17, 2 }
   0xf   : > { %s656_s26 = scalar_select %p38_p7, %s563_s14, %s40_s21  }
  0x10   : > { %p658_p11 = por %p127_p10, %p53_p3  ;;  %p409_p13 = scmp.lt.s32.totalorder %s575_s17, 2 }
  0x11   : > { %s153_s28 = sand.u32 1, %s563_s14   ;;  %s395_s30 = smul.u32 80, %s571_s16 }
  0x12   : > { %s394_s29 = smul.u32 80, %s153_s28  ;;  %p402_p0 = pnand %p409_p13, %p641_p4 }
  0x13   : > { %s164_s6 = scalar_lea.hbm %s727_s0, %s395_s30  ;;  %p384_p1 = scmp.ge.s32.totalorder %s575_s17, 1 }
  0x14   : > { %s157_s7 = scalar_lea.vmem [#allocation2], %s394_s29  ;;  %s165_s9 = sshll.u32 %s164_s6, 4  ;;  %s166_s9 = int_to_ptr.hbm [resolvable:$true] %s165_s9 }
  0x15   : > { %s167_s8 = sshll.u32 %s157_s7, 4  ;;  %s154_s10 = scalar_lea.sflag [#allocation3], %s153_s28  ;;  %s168_s8 = int_to_ptr.vmem [resolvable:$true] %s167_s8 }
  0x16   : > { %s577_s11 = smov 256   ;;  %s578_s18 = smov 16  }
  0x17   : > { %404 = dma.hbm_to_vmem [thread:$0]  (!%p402_p0), %s166_s9, 1280, %s168_s8, %s154_s10, %s577_s11, %s577_s11, %s578_s18  }
  0x18   : > { %p175_p2 = scmp.lt.s32.totalorder %s575_s17, 3 }
  0x1a   : > { %p176_p3 = pnand %p384_p1, %p175_p2 }
  0x1b   : > { %s674_s19 = sand.u32 (!%p176_p3), 1, %s559_s13  }
  0x1c   : > { %179 = sbr.rel (%p176_p3) target bundleno = 178 (0xb2), region = 32  ;;  %s182_s22 = scalar_lea.sflag (!%p176_p3), [#allocation3], %s674_s19 }
  0x1d   : > { %s396_s21 = smul.u32 (!%p176_p3), 80, %s674_s19 }
  0x1f   : > { %s185_s23 = scalar_lea.vmem (!%p176_p3), [#allocation2], %s396_s21 }
  0x21   : > { %546 = dma.done.wait (%p647_p8), %s182_s22, 1280  }
  0x22   : > { %548 = vsyncadd (%p647_p8), %s182_s22, 4294966016  ;;  %v579_v0 = vmov 0   ;;  %v220_v1 = vld [vmem:[%s185_s23 + $0x40] sm:$0xff]  ;;  %v221_v2 = vld [vmem:[%s185_s23 + $0x48] sm:$0xff]  ;;  %vm228_vm0 = vcmask 326656   ;;  %s385_s4 = sshll.u32 %s674_s19, 4 }
  0x23   : > { %462 = vset.pattern.permute.xlu0 %v579_v0  ;;  %v218_v3 = vld [vmem:[%s185_s23 + $0x30] sm:$0xff]  ;;  %243 = vmatpush.msra.mxu0 %v220_v1  ;;  %v219_v4 = vld [vmem:[%s185_s23 + $0x38] sm:$0xff]  ;;  %v216_v5 = vld [vmem:[%s185_s23 + $0x20] sm:$0xff]  ;;  %s393_s5 = sshll.u32 %s567_s15, 4  ;;  %s208_s9 = scalar_lea.vmem [#allocation5], %s385_s4 }
  0x24   : > { %263 = vmatpush.msra.mxu1 %v221_v2  ;;  %v217_v6 = vld [vmem:[%s185_s23 + $0x28] sm:$0xff]  ;;  %v222_v7 = vld [vmem:[%s729_s2] sm:$0xff]  ;;  %v215_v9 = vld [vmem:[%s185_s23 + $0x18] sm:$0xff]  ;;  %s290_s8 = scalar_lea.hbm %s730_s3, %s393_s5  ;;  %s292_s10 = sshll.u32 %s208_s9, 4  ;;  %s293_s10 = int_to_ptr.vmem [resolvable:$true] %s292_s10 }
  0x25   : > { %244 = vmatpush.msra.mxu0 %v218_v3  ;;  %v214_v8 = vld [vmem:[%s185_s23 + $0x10] sm:$0xff]  ;;  %225 = vperm.xlu0 %462, %v222_v7   ;;  %v212_v10 = vld [vmem:[%s185_s23] sm:$0xff]  ;;  %v213_v11 = vld [vmem:[%s185_s23 + $0x8] sm:$0xff]  ;;  %s294_s11 = sshll.u32 %s290_s8, 4  ;;  %s277_s15 = scalar_lea.sflag [#allocation4], %s674_s19  ;;  %s295_s11 = int_to_ptr.hbm [resolvable:$true] %s294_s11 }
  0x26   : > { %264 = vmatpush.msra.mxu1 %v219_v4  ;;  %v211_v12 = vld [vmem:[%s728_s1] sm:$0xff]  ;;  %s507_s18 = sshra.s32 %s295_s11, 4  ;;  %s513_s28 = scalar_lea.hbm %s730_s3, 32  ;;  %s508_s18 = int_to_ptr.hbm [resolvable:$true] %s507_s18 }
  0x27   : > { %245 = vmatpush.msra.mxu0 %v216_v5  ;;  %s509_s21 = scalar_lea.hbm %s508_s18, 16  ;;  %p514_p7 = scmp.lt.s32.totalorder %s508_s18, %s730_s3 }
  0x28   : > { %265 = vmatpush.msra.mxu1 %v217_v6  ;;  %p510_p4 = scmp.ne.s32.totalorder %s508_s18, %s509_s21  ;;  %p515_p8 = scmp.lt.s32.totalorder %s513_s28, %s509_s21 }
  0x29   : > { %246 = vmatpush.msra.mxu0 %v214_v8 }
  0x2a   : > { %266 = vmatpush.msra.mxu1 %v215_v9  ;;  %p511_p5 = pnand %p510_p4, %p651_p9  ;;  %p516_p10 = por %p515_p8, %p514_p7 }
  0x2b   : > { %247 = vmatpush.msra.mxu0 %v212_v10 }
  0x2c   : > { %267 = vmatpush.msra.mxu1 %v213_v11  ;;  %386 = vmatmul.msk.f32.vlgmr.msra.gmra.mxu0 %vm228_vm0, %v211_v12  ;;  %p512_p6 = pneg %p511_p5 }
  0x2d   : > { %387 = vmatmul.msk.f32.vlgmr.msra.gmra.mxu1 %vm228_vm0, %v211_v12 }
  0x2e   : > { %p517_p13 = pnand %p516_p10, %p512_p6 }
  0x97   : > { %v226_v13 = vpop.permute.xlu0 %225 }
  0xa9   : > { %v249_v14 = vpop.f32.mrf.mxu0 }
  0xaa   : > { %v269_v15 = vpop.f32.mrf.mxu1  ;;  %v250_v16 = vadd.f32 %v249_v14, %v226_v13 }
  0xab   : > { %v270_v17 = vadd.f32 %v269_v15, %v226_v13 }
  0xac   : > { %v272_v18 = vmax.f32 %v250_v16, 0.0 }
  0xad   : > { %v273_v19 = vmax.f32 %v270_v17, 0.0 }
  0xae   : > { %274 = vst [vmem:[%s208_s9] sm:$0xff] %v272_v18 }
  0xaf   : > { %275 = vst [vmem:[%s208_s9 + $0x8] sm:$0xff] %v273_v19 }
  0xb0   : > { %520 = shalt.err (!%p517_p13)
}
  0xb1   : > { %399 = dma.vmem_to_hbm [thread:$0]  (%p651_p9), %s293_s10, 256, %s295_s11, %s277_s15  }
  0xb2 PF: > { %s306_s19 = sand.u32 1, %s555_s12   ;;  %p406_p0 = pnand %p382_p12, %p658_p11 }
  0xb3   : > { %s307_s30 = scalar_lea.sflag [#allocation4], %s306_s19 }
  0xb4   : > { %p407_p1 = pneg %p406_p0 }
  0xb6   : > { %550 = dma.done.wait (%p407_p1), %s307_s30, 256  }
  0xb7   : > { %552 = vsyncadd (%p407_p1), %s307_s30, 4294967040  ;;  %s19_s17 = sadd.s32 1, %s575_s17   ;;  %s735_s12 = smov %s559_s13 }
  0xb8   : > { %p16_p2 = scmp.ge.s32.totalorder %s19_s17, 4   ;;  %s736_s13 = smov %s563_s14 }
  0xb9   : > { %s737_s14 = smov %s656_s26  ;;  %s738_s15 = smov %s571_s16 }
  0xba   : > { %s739_s16 = smov %s741_s20  ;;  %18 = sbr.rel (!%p16_p2) target bundleno = 6 (0x6), region = 77 }
  0xbf   :  { %313 = vsyncpa [#allocation3], 1 }
  0xc0   :  { %315 = vsyncpa [#allocation3 + $0x1], 1 }
  0xc1   :  { %316 = vsyncpa [#allocation4], 1 }
  0xc2   :  { %318 = vsyncpa [#allocation4 + $0x1], 1 }

</bundles_post_ra>
